<compile_context>
chip_gen: v7x
topology: tpu7x:2x2x1
jax: 0.10.0
libtpu: 0.0.40
codegen_flags: <defaults>
</compile_context>

<pallas_src>
import jax
import jax.numpy as jnp
from jax.experimental import pallas as pl
from jax.experimental.pallas import tpu as pltpu

_LANE = 128


def _round_up(n, m):
    return ((n + m - 1) // m) * m


def _choose_batch_tiling(B, tm_cap=512):
    """Pick (batch tile, padded batch).  Small batches run as one full-batch tile with no
    padding; larger batches use 16-row-multiple tiles and prefer >= 2 grid steps so the
    'parallel' grid axis can shard across v7x's two TensorCores."""
    if B <= 16:
        return B, B  # block == full array dims -> no (8,128) constraint, no padding
    tm = min(tm_cap, _round_up(B, 16))
    if _round_up(B, tm) // tm < 2:
        tm = max(16, _round_up(tm // 2, 16))
    B_p = _round_up(B, tm)
    return tm, B_p


def _mlp_kernel(x_ref, w1_ref, b1_ref, w2_ref, b2_ref, w3_ref, b3_ref, o_ref):
    # Layer 1: Linear(input_dim -> 512) + ReLU   (Dropout == identity in eval mode).
    h1 = jnp.dot(x_ref[...], w1_ref[...], preferred_element_type=jnp.float32)
    h1 = jnp.maximum(h1 + b1_ref[...], 0.0).astype(w2_ref.dtype)  # cast fused into ReLU

    # Layer 2: Linear(512 -> 256) + ReLU         (Dropout == identity in eval mode).
    h2 = jnp.dot(h1, w2_ref[...], preferred_element_type=jnp.float32)
    h2 = jnp.maximum(h2 + b2_ref[...], 0.0).astype(w3_ref.dtype)

    # Layer 3: Linear(256 -> num_classes), computed on a lane-dense padded 128-wide tile;
    # bf16 writeback (f32 accumulation above).
    out = jnp.dot(h2, w3_ref[...], preferred_element_type=jnp.float32)
    o_ref[...] = (out + b3_ref[...]).astype(o_ref.dtype)


def pack_params(params, *, compute_dtype=jnp.bfloat16):
    """One-time packing: bf16 cast + zero-pad contraction dim (K) and output dim (N) to
    lane-dense multiples of 128.  Zero padding is exact.  Do this once, not per forward."""
    w1, b1, w2, b2, w3, b3 = params
    K, H1 = w1.shape
    H2, N = w3.shape
    K_p = _round_up(max(K, _LANE), _LANE)
    N_p = _round_up(max(N, _LANE), _LANE)

    w1_p = jnp.zeros((K_p, H1), compute_dtype).at[:K, :].set(w1.astype(compute_dtype))
    w2_p = w2.astype(compute_dtype)
    w3_p = jnp.zeros((H2, N_p), compute_dtype).at[:, :N].set(w3.astype(compute_dtype))
    b1_p = b1.reshape(1, H1).astype(jnp.float32)
    b2_p = b2.reshape(1, H2).astype(jnp.float32)
    b3_p = jnp.zeros((1, N_p), jnp.float32).at[:, :N].set(b3.reshape(1, N).astype(jnp.float32))
    return (w1_p, b1_p, w2_p, b2_p, w3_p, b3_p)


def mlp_forward(x, packed_params, num_classes, *, tm_cap=512):
    """Fused MLP forward.  x: (B, input_dim) float32, packed_params from pack_params().
    Returns (B, num_classes) float32 logits."""
    w1_p, b1_p, w2_p, b2_p, w3_p, b3_p = packed_params
    B, K = x.shape
    K_p, H1 = w1_p.shape
    H2 = w2_p.shape[1]
    N_p = w3_p.shape[1]
    compute_dtype = w1_p.dtype

    tm, B_p = _choose_batch_tiling(B, tm_cap)
    grid = (B_p // tm,)

    # Per-call input prep: only pad K (and batch only when the tiling requires it).
    x_c = x.astype(compute_dtype)
    if (B_p != B) or (K_p != K):
        x_c = jnp.pad(x_c, ((0, B_p - B), (0, K_p - K)))

    flops = 2 * B_p * (K_p * H1 + H1 * H2 + H2 * N_p)
    bytes_accessed = (
        x_c.size * x_c.dtype.itemsize
        + sum(a.size * a.dtype.itemsize for a in packed_params)
        + B_p * N_p * 2  # bf16 output slab
    )

    out_padded = pl.pallas_call(
        _mlp_kernel,
        out_shape=jax.ShapeDtypeStruct((B_p, N_p), jnp.bfloat16),
        grid=grid,
        in_specs=[
            # x tile is software-pipelined over the batch grid.
            pl.BlockSpec((tm, K_p), lambda i: (i, 0)),
            # Weights / biases: constant index_map -> fetched once, VMEM-resident.
            pl.BlockSpec(w1_p.shape, lambda i: (0, 0)),
            pl.BlockSpec(b1_p.shape, lambda i: (0, 0)),
            pl.BlockSpec(w2_p.shape, lambda i: (0, 0)),
            pl.BlockSpec(b2_p.shape, lambda i: (0, 0)),
            pl.BlockSpec(w3_p.shape, lambda i: (0, 0)),
            pl.BlockSpec(b3_p.shape, lambda i: (0, 0)),
        ],
        out_specs=pl.BlockSpec((tm, N_p), lambda i: (i, 0)),
        compiler_params=pltpu.CompilerParams(dimension_semantics=("parallel",)),
        cost_estimate=pl.CostEstimate(
            flops=flops, transcendentals=0, bytes_accessed=bytes_accessed
        ),
    )(x_c, w1_p, b1_p, w2_p, b2_p, w3_p, b3_p)

    return out_padded[:B, :num_classes].astype(jnp.float32)


def init_params(key, input_dim, num_classes):
    """Deterministic synthetic parameters matching the torch module's shapes (stored (in, out))."""
    ks = jax.random.split(key, 6)

    def lin(kw, kb, fan_in, fan_out):
        # torch default init: U(-1/sqrt(fan_in), 1/sqrt(fan_in))
        bound = 1.0 / jnp.sqrt(fan_in)
        w = jax.random.uniform(kw, (fan_in, fan_out), jnp.float32, -bound, bound)
        b = jax.random.uniform(kb, (1, fan_out), jnp.float32, -bound, bound)
        return w, b

    w1, b1 = lin(ks[0], ks[1], input_dim, 512)
    w2, b2 = lin(ks[2], ks[3], 512, 256)
    w3, b3 = lin(ks[4], ks[5], 256, num_classes)
    return (w1, b1, w2, b2, w3, b3)


if __name__ == "__main__":
    key = jax.random.PRNGKey(0)
    k_x, k_p = jax.random.split(key)

    B, input_dim, num_classes = 8, 32, 10
    x = jax.random.normal(k_x, (B, input_dim), jnp.float32)
    params = init_params(k_p, input_dim, num_classes)

    packed = pack_params(params)              # one-time weight packing
    packed = jax.block_until_ready(packed)

    out = mlp_forward(x, packed, num_classes)
    out = jax.block_until_ready(out)

    # Pure-JAX f32 reference (eval-mode dropout == identity).  Tolerance reflects bf16
    # matmul operands + bf16 logits writeback (f32 accumulation in-kernel).
    w1, b1, w2, b2, w3, b3 = params
    ref = jnp.maximum(x @ w1 + b1, 0.0)
    ref = jnp.maximum(ref @ w2 + b2, 0.0)
    ref = ref @ w3 + b3
    assert out.shape == (B, num_classes)
    assert jnp.allclose(out, ref, atol=5e-2, rtol=5e-2), float(jnp.max(jnp.abs(out - ref)))

    print("KERNEL_OK")
</pallas_src>

<mosaic_0001>
module attributes {stable_mosaic.version = 11 : i64} {
  func.func @_mlp_kernel(%arg0: i32, %arg1: memref<8x128xbf16, #tpu.memory_space<vmem>>, %arg2: memref<128x512xbf16, #tpu.memory_space<vmem>>, %arg3: memref<1x512xf32, #tpu.memory_space<vmem>>, %arg4: memref<512x256xbf16, #tpu.memory_space<vmem>>, %arg5: memref<1x256xf32, #tpu.memory_space<vmem>>, %arg6: memref<256x128xbf16, #tpu.memory_space<vmem>>, %arg7: memref<1x128xf32, #tpu.memory_space<vmem>>, %arg8: memref<8x128xbf16, #tpu.memory_space<vmem>>) attributes {dimension_semantics = [#tpu.dimension_semantics<parallel>], iteration_bounds = array<i64: 1>, scalar_prefetch = 0 : i64, scratch_operands = 0 : i64, tpu.core_type = #tpu.core_type<tc>, window_params = [{transform_indices = @transform_0, window_bounds = array<i64: 8, 128>}, {pipeline_mode = #tpu.pipeline_mode<synchronous>, transform_indices = @transform_1, window_bounds = array<i64: 128, 512>}, {pipeline_mode = #tpu.pipeline_mode<synchronous>, transform_indices = @transform_2, window_bounds = array<i64: 1, 512>}, {pipeline_mode = #tpu.pipeline_mode<synchronous>, transform_indices = @transform_3, window_bounds = array<i64: 512, 256>}, {pipeline_mode = #tpu.pipeline_mode<synchronous>, transform_indices = @transform_4, window_bounds = array<i64: 1, 256>}, {pipeline_mode = #tpu.pipeline_mode<synchronous>, transform_indices = @transform_5, window_bounds = array<i64: 256, 128>}, {pipeline_mode = #tpu.pipeline_mode<synchronous>, transform_indices = @transform_6, window_bounds = array<i64: 1, 128>}, {transform_indices = @transform_7, window_bounds = array<i64: 8, 128>}]} {
    %c0 = arith.constant 0 : index
    %c0_0 = arith.constant 0 : index
    %0 = vector.load %arg1[%c0, %c0_0] : memref<8x128xbf16, #tpu.memory_space<vmem>>, vector<8x128xbf16>
    %c0_1 = arith.constant 0 : index
    %c0_2 = arith.constant 0 : index
    %1 = vector.load %arg2[%c0_1, %c0_2] : memref<128x512xbf16, #tpu.memory_space<vmem>>, vector<128x512xbf16>
    %cst = arith.constant dense<0.000000e+00> : vector<8x512xf32>
    %2 = tpu.matmul %0, %1, %cst {dimension_numbers = #tpu.dot_dimension_numbers<[1], [0], [0], [1], [0, 0, 1, 1], [], []>} : vector<8x128xbf16>, vector<128x512xbf16>, vector<8x512xf32> -> vector<8x512xf32>
    %c0_3 = arith.constant 0 : index
    %c0_4 = arith.constant 0 : index
    %3 = vector.load %arg3[%c0_3, %c0_4] : memref<1x512xf32, #tpu.memory_space<vmem>>, vector<1x512xf32>
    %4 = vector.broadcast %3 : vector<1x512xf32> to vector<8x512xf32>
    %5 = arith.addf %2, %4 : vector<8x512xf32>
    %cst_5 = arith.constant 0.000000e+00 : f32
    %6 = vector.broadcast %cst_5 : f32 to vector<8x512xf32>
    %7 = arith.maximumf %5, %6 : vector<8x512xf32>
    %8 = arith.truncf %7 : vector<8x512xf32> to vector<8x512xbf16>
    %c0_6 = arith.constant 0 : index
    %c0_7 = arith.constant 0 : index
    %9 = vector.load %arg4[%c0_6, %c0_7] : memref<512x256xbf16, #tpu.memory_space<vmem>>, vector<512x256xbf16>
    %cst_8 = arith.constant dense<0.000000e+00> : vector<8x256xf32>
    %10 = tpu.matmul %8, %9, %cst_8 {dimension_numbers = #tpu.dot_dimension_numbers<[1], [0], [0], [1], [0, 0, 1, 1], [], []>} : vector<8x512xbf16>, vector<512x256xbf16>, vector<8x256xf32> -> vector<8x256xf32>
    %c0_9 = arith.constant 0 : index
    %c0_10 = arith.constant 0 : index
    %11 = vector.load %arg5[%c0_9, %c0_10] : memref<1x256xf32, #tpu.memory_space<vmem>>, vector<1x256xf32>
    %12 = vector.broadcast %11 : vector<1x256xf32> to vector<8x256xf32>
    %13 = arith.addf %10, %12 : vector<8x256xf32>
    %cst_11 = arith.constant 0.000000e+00 : f32
    %14 = vector.broadcast %cst_11 : f32 to vector<8x256xf32>
    %15 = arith.maximumf %13, %14 : vector<8x256xf32>
    %16 = arith.truncf %15 : vector<8x256xf32> to vector<8x256xbf16>
    %c0_12 = arith.constant 0 : index
    %c0_13 = arith.constant 0 : index
    %17 = vector.load %arg6[%c0_12, %c0_13] : memref<256x128xbf16, #tpu.memory_space<vmem>>, vector<256x128xbf16>
    %cst_14 = arith.constant dense<0.000000e+00> : vector<8x128xf32>
    %18 = tpu.matmul %16, %17, %cst_14 {dimension_numbers = #tpu.dot_dimension_numbers<[1], [0], [0], [1], [0, 0, 1, 1], [], []>} : vector<8x256xbf16>, vector<256x128xbf16>, vector<8x128xf32> -> vector<8x128xf32>
    %c0_15 = arith.constant 0 : index
    %c0_16 = arith.constant 0 : index
    %19 = vector.load %arg7[%c0_15, %c0_16] : memref<1x128xf32, #tpu.memory_space<vmem>>, vector<1x128xf32>
    %20 = vector.broadcast %19 : vector<1x128xf32> to vector<8x128xf32>
    %21 = arith.addf %18, %20 : vector<8x128xf32>
    %22 = arith.truncf %21 : vector<8x128xf32> to vector<8x128xbf16>
    %c0_17 = arith.constant 0 : index
    %c0_18 = arith.constant 0 : index
    %23 = vector.load %arg8[%c0_17, %c0_18] : memref<8x128xbf16, #tpu.memory_space<vmem>>, vector<8x128xbf16>
    tpu.vector_store %arg8[%c0_17, %c0_18], %22 {strides = array<i32>} : memref<8x128xbf16, #tpu.memory_space<vmem>>, vector<8x128xbf16>,
    return
  }
  func.func @transform_0(%arg0: i32) -> (i32, i32) {
    %c0_i32 = arith.constant 0 : i32
    %c0_i32_0 = arith.constant 0 : i32
    return %arg0, %c0_i32 : i32, i32
  }
  func.func @transform_1(%arg0: i32) -> (i32, i32) {
    %c0_i32 = arith.constant 0 : i32
    %c0_i32_0 = arith.constant 0 : i32
    %c0_i32_1 = arith.constant 0 : i32
    return %c0_i32, %c0_i32_0 : i32, i32
  }
  func.func @transform_2(%arg0: i32) -> (i32, i32) {
    %c0_i32 = arith.constant 0 : i32
    %c0_i32_0 = arith.constant 0 : i32
    %c0_i32_1 = arith.constant 0 : i32
    return %c0_i32, %c0_i32_0 : i32, i32
  }
  func.func @transform_3(%arg0: i32) -> (i32, i32) {
    %c0_i32 = arith.constant 0 : i32
    %c0_i32_0 = arith.constant 0 : i32
    %c0_i32_1 = arith.constant 0 : i32
    return %c0_i32, %c0_i32_0 : i32, i32
  }
  func.func @transform_4(%arg0: i32) -> (i32, i32) {
    %c0_i32 = arith.constant 0 : i32
    %c0_i32_0 = arith.constant 0 : i32
    %c0_i32_1 = arith.constant 0 : i32
    return %c0_i32, %c0_i32_0 : i32, i32
  }
  func.func @transform_5(%arg0: i32) -> (i32, i32) {
    %c0_i32 = arith.constant 0 : i32
    %c0_i32_0 = arith.constant 0 : i32
    %c0_i32_1 = arith.constant 0 : i32
    return %c0_i32, %c0_i32_0 : i32, i32
  }
  func.func @transform_6(%arg0: i32) -> (i32, i32) {
    %c0_i32 = arith.constant 0 : i32
    %c0_i32_0 = arith.constant 0 : i32
    %c0_i32_1 = arith.constant 0 : i32
    return %c0_i32, %c0_i32_0 : i32, i32
  }
  func.func @transform_7(%arg0: i32) -> (i32, i32) {
    %c0_i32 = arith.constant 0 : i32
    %c0_i32_0 = arith.constant 0 : i32
    return %arg0, %c0_i32 : i32, i32
  }
}

</mosaic_0001>

<bundles_post_ra>
// kernel: tpu_custom_call.1
= control target key start
LH: loop header
LB: loop body
LE: loop exit
PB: predicated region body
PF: predicated region fallthrough
CT: control target
= control target key end

     0   :  { %12 = vsyncpa [#allocation3], 0  ;;  %s1638_s0 = inlined_call_operand.hbm [shape: bf16[8,128], index: 0, kind: input, shape index: {}]   ;;  %s1639_s1 = inlined_call_operand.hbm [shape: bf16[128,512], index: 1, kind: input, shape index: {}]   ;;  %s1640_s2 = inlined_call_operand.vmem [shape: f32[1,512], index: 2, kind: input, shape index: {}]   ;;  %s1641_s3 = inlined_call_operand.hbm [shape: bf16[512,256], index: 3, kind: input, shape index: {}]   ;;  %s1642_s4 = inlined_call_operand.vmem [shape: f32[1,256], index: 4, kind: input, shape index: {}]   ;;  %s1643_s5 = inlined_call_operand.hbm [shape: bf16[256,128], index: 5, kind: input, shape index: {}]   ;;  %s1644_s6 = inlined_call_operand.vmem [shape: f32[1,128], index: 6, kind: input, shape index: {}]   ;;  %s1645_s7 = inlined_call_operand.hbm [shape: bf16[8,128], index: 7, kind: output, shape index: {}]  }
   0x1   :  { %13 = vsyncpa [#allocation6], 0 }
   0x2   :  { %14 = vsyncpa [#allocation9], 0 }
   0x3   :  { %15 = vsyncpa [#allocation4], 0  ;;  %s1493_s24 = smov [#allocation5]   ;;  %s1375_s28 = scalar_lea.hbm %s1639_s1, 4096 }
   0x4   :  { %s31_s25 = sshll.u32 %s1493_s24, 4  ;;  %p1376_p0 = scmp.ne.s32.totalorder %s1639_s1, %s1375_s28  ;;  %s32_s25 = int_to_ptr.vmem [resolvable:$true] %s31_s25 }
   0x5   :  { %p1379_p1 = scmp.lt.u32.totalorder %s1375_s28, %s1639_s1 }
   0x7   :  { %p1381_p2 = pnand %p1379_p1, %p1376_p0 }
   0x9   :  { %1384 = shalt.err (!%p1381_p2)
}
   0xa   :  { %s1385_s10 = scalar_lea.vmem %s32_s25, 4096  ;;  %p1390_p4 = scmp.lt.s32.totalorder %s32_s25, %s32_s25 }
   0xb   :  { %p1386_p3 = scmp.ne.s32.totalorder %s32_s25, %s1385_s10  ;;  %p1391_p5 = scmp.lt.s32.totalorder %s1385_s10, %s1385_s10 }
   0xd   :  { %p1392_p6 = por %p1391_p5, %p1390_p4 }
   0xf   :  { %p1393_p7 = pnand %p1392_p6, %p1386_p3 }
  0x11   :  { %1396 = shalt.err (!%p1393_p7)
}
  0x12   :  { %s1494_s11 = smov 256   ;;  %s1495_s12 = smov 16  }
  0x13   :  { %37 = dma.hbm_to_vmem [thread:$0]  %s1639_s1, 4096, %s32_s25, [#allocation6], %s1494_s11, %s1494_s11, %s1495_s12  }
  0x14   :  { %s1496_s15 = smov [#allocation2]   ;;  %s1497_s17 = smov [#allocation7]  }
  0x15   :  { %s22_s16 = sshll.u32 %s1496_s15, 4  ;;  %s45_s18 = sshll.u32 %s1497_s17, 4  ;;  %s23_s16 = int_to_ptr.vmem [resolvable:$true] %s22_s16  ;;  %s46_s18 = int_to_ptr.vmem [resolvable:$true] %s45_s18 }
  0x16   :  { %s1397_s21 = scalar_lea.hbm %s1638_s0, 64 }
  0x17   :  { %p1398_p8 = scmp.ne.s32.totalorder %s1638_s0, %s1397_s21  ;;  %p1401_p9 = scmp.lt.u32.totalorder %s1397_s21, %s1638_s0 }
  0x19   :  { %p1403_p10 = pnand %p1401_p9, %p1398_p8 }
  0x1b   :  { %1406 = shalt.err (!%p1403_p10)
}
  0x1c   :  { %s1407_s1 = scalar_lea.vmem %s23_s16, 64  ;;  %p1412_p12 = scmp.lt.s32.totalorder %s23_s16, %s23_s16 }
  0x1d   :  { %p1408_p11 = scmp.ne.s32.totalorder %s23_s16, %s1407_s1  ;;  %p1413_p13 = scmp.lt.s32.totalorder %s1407_s1, %s1407_s1 }
  0x1f   :  { %p1414_p0 = por %p1413_p13, %p1412_p12 }
  0x21   :  { %p1415_p1 = pnand %p1414_p0, %p1408_p11 }
  0x23   :  { %1418 = shalt.err (!%p1415_p1)
}
  0x24   :  { %25 = dma.hbm_to_vmem [thread:$0]  %s1638_s0, 64, %s23_s16, [#allocation3]  }
  0x25   :  { %s1419_s30 = scalar_lea.hbm %s1641_s3, 8192 }
  0x26   :  { %p1420_p2 = scmp.ne.s32.totalorder %s1641_s3, %s1419_s30  ;;  %p1423_p3 = scmp.lt.u32.totalorder %s1419_s30, %s1641_s3 }
  0x28   :  { %p1425_p4 = pnand %p1423_p3, %p1420_p2 }
  0x2a   :  { %1428 = shalt.err (!%p1425_p4)
}
  0x2b   :  { %s1429_s12 = scalar_lea.vmem %s46_s18, 8192  ;;  %p1434_p6 = scmp.lt.s32.totalorder %s46_s18, %s46_s18 }
  0x2c   :  { %p1430_p5 = scmp.ne.s32.totalorder %s46_s18, %s1429_s12  ;;  %p1435_p7 = scmp.lt.s32.totalorder %s1429_s12, %s1429_s12 }
  0x2e   :  { %p1436_p8 = por %p1435_p7, %p1434_p6 }
  0x30   :  { %p1437_p9 = pnand %p1436_p8, %p1430_p5 }
  0x32   :  { %1440 = shalt.err (!%p1437_p9)
}
  0x33   :  { %s1498_s0 = smov 128   ;;  %s1499_s13 = smov 8  }
  0x34   :  { %51 = dma.hbm_to_vmem [thread:$0]  %s1641_s3, 8192, %s46_s18, [#allocation6], %s1498_s0, %s1498_s0, %s1499_s13  }
  0x35   :  { %s1500_s16 = smov [#allocation8]   ;;  %s1441_s21 = scalar_lea.hbm %s1643_s5, 2048 }
  0x36   :  { %s59_s17 = sshll.u32 %s1500_s16, 4  ;;  %p1442_p10 = scmp.ne.s32.totalorder %s1643_s5, %s1441_s21  ;;  %s60_s17 = int_to_ptr.vmem [resolvable:$true] %s59_s17 }
  0x37   :  { %p1445_p11 = scmp.lt.u32.totalorder %s1441_s21, %s1643_s5 }
  0x39   :  { %p1447_p12 = pnand %p1445_p11, %p1442_p10 }
  0x3b   :  { %1450 = shalt.err (!%p1447_p12)
}
  0x3c   :  { %s1451_s1 = scalar_lea.vmem %s60_s17, 2048  ;;  %p1456_p0 = scmp.lt.s32.totalorder %s60_s17, %s60_s17 }
  0x3d   :  { %p1452_p13 = scmp.ne.s32.totalorder %s60_s17, %s1451_s1  ;;  %p1457_p1 = scmp.lt.s32.totalorder %s1451_s1, %s1451_s1 }
  0x3f   :  { %p1458_p2 = por %p1457_p1, %p1456_p0 }
  0x41   :  { %p1459_p3 = pnand %p1458_p2, %p1452_p13 }
  0x43   :  { %1462 = shalt.err (!%p1459_p3)
}
  0x44   :  { %s1501_s3 = smov 64   ;;  %s1502_s18 = smov 4  }
  0x45   :  { %65 = dma.hbm_to_vmem [thread:$0]  %s1643_s5, 2048, %s60_s17, [#allocation9], %s1501_s3, %s1501_s3, %s1502_s18  }
  0x46   :  { %1485 = dma.done.wait [#allocation3], 64  }
  0x47   :  { %1486 = vsyncadd [#allocation3], 4294967232 }
  0x48   :  { %1487 = dma.done.wait [#allocation6], 12288  }
  0x49   :  { %1488 = vsyncadd [#allocation6], 4294955008 }
  0x4a   :  { %1489 = dma.done.wait [#allocation9], 2048  }
  0x4b   :  { %1490 = vsyncadd [#allocation9], 4294965248  ;;  %v1503_v0 = vmov 0   ;;  %v1215_v1 = vld [vmem:[#allocation5 + $0x4] ss:$16 sps:$4 sm:$0xff]   ;;  %s1504_s8 = smov [#allocation10]  }
  0x4c   :  { %328 = vmatprep.mubr.bf16.mxu1 %v1503_v0  ;;  %v1217_v2 = vld [vmem:[#allocation5] ss:$16 sps:$4 sm:$0xff]   ;;  %296 = vmatprep.subr.bf16.mxu1 %v1215_v1  ;;  %v1218_v3 = vld [vmem:[#allocation5 + $0x24] ss:$16 sps:$4 sm:$0xff]   ;;  %v1241_v22 = vld [vmem:[#allocation5 + $0xc] ss:$16 sps:$4 sm:$0xff]  }
  0x4d   :  { %297 = vmatpush1.bf16.msra.mxu1 %v1217_v2  ;;  %v1220_v4 = vld [vmem:[#allocation5 + $0x20] ss:$16 sps:$4 sm:$0xff]   ;;  %v1221_v5 = vld [vmem:[#allocation5 + $0x44] ss:$16 sps:$4 sm:$0xff]   ;;  %v1593_v24 = vld [vmem:[#allocation2] sm:$0xf] }
  0x4e   :  { %298 = vmatprep.subr.bf16.mxu1 %v1218_v3  ;;  %v1223_v6 = vld [vmem:[#allocation5 + $0x40] ss:$16 sps:$4 sm:$0xff]   ;;  %v1224_v7 = vld [vmem:[#allocation5 + $0x64] ss:$16 sps:$4 sm:$0xff]   ;;  %v1239_v26 = vld [vmem:[#allocation5 + $0x8] ss:$16 sps:$4 sm:$0xff]  }
  0x4f   :  { %v1226_v8 = vld [vmem:[#allocation5 + $0x60] ss:$16 sps:$4 sm:$0xff]   ;;  %v1227_v9 = vld [vmem:[#allocation5 + $0x84] ss:$16 sps:$4 sm:$0xff]   ;;  %v1244_v27 = vld [vmem:[#allocation5 + $0x2c] ss:$16 sps:$4 sm:$0xff]  }
  0x50   :  { %v1229_v10 = vld [vmem:[#allocation5 + $0x80] ss:$16 sps:$4 sm:$0xff]   ;;  %v1230_v11 = vld [vmem:[#allocation5 + $0xa4] ss:$16 sps:$4 sm:$0xff]   ;;  %v1242_v30 = vld [vmem:[#allocation5 + $0x28] ss:$16 sps:$4 sm:$0xff]  }
  0x51   :  { %299 = vmatpush1.bf16.msra.mxu1 %v1220_v4  ;;  %v1232_v12 = vld [vmem:[#allocation5 + $0xa0] ss:$16 sps:$4 sm:$0xff]   ;;  %v1233_v13 = vld [vmem:[#allocation5 + $0xc4] ss:$16 sps:$4 sm:$0xff]   ;;  %v1247_v31 = vld [vmem:[#allocation5 + $0x4c] ss:$16 sps:$4 sm:$0xff]  }
  0x52   :  { %300 = vmatprep.subr.bf16.mxu1 %v1221_v5  ;;  %v1235_v14 = vld [vmem:[#allocation5 + $0xc0] ss:$16 sps:$4 sm:$0xff]   ;;  %v1263_v15 = vld [vmem:[#allocation7 + $0x4] ss:$8 sps:$4 sm:$0xff]   ;;  %v1266_v17 = vld [vmem:[#allocation7 + $0x14] ss:$8 sps:$4 sm:$0xff]  }
  0x53   :  { %v1265_v16 = vld [vmem:[#allocation7] ss:$8 sps:$4 sm:$0xff]   ;;  %v1236_v18 = vld [vmem:[#allocation5 + $0xe4] ss:$16 sps:$4 sm:$0xff]   ;;  %782 = vmatprep.subr.bf16.mxu0 %v1263_v15  ;;  %v1268_v19 = vld [vmem:[#allocation7 + $0x10] ss:$8 sps:$4 sm:$0xff]   ;;  %v116_v15 = vlaneseq }
  0x54   :  { %783 = vmatpush1.bf16.msra.mxu0 %v1265_v16  ;;  %v1269_v20 = vld [vmem:[#allocation7 + $0x24] ss:$8 sps:$4 sm:$0xff]   ;;  %v1238_v21 = vld [vmem:[#allocation5 + $0xe0] ss:$16 sps:$4 sm:$0xff]   ;;  %v1272_v25 = vld [vmem:[#allocation7 + $0x34] ss:$8 sps:$4 sm:$0xff]  }
  0x55   :  { %301 = vmatpush1.bf16.msra.mxu1 %v1223_v6  ;;  %784 = vmatprep.subr.bf16.mxu0 %v1266_v17  ;;  %v1271_v23 = vld [vmem:[#allocation7 + $0x20] ss:$8 sps:$4 sm:$0xff]   ;;  %v1274_v28 = vld [vmem:[#allocation7 + $0x30] ss:$8 sps:$4 sm:$0xff]   ;;  %v1275_v29 = vld [vmem:[#allocation7 + $0x44] ss:$8 sps:$4 sm:$0xff]  }
  0x56   :  { %302 = vmatprep.subr.bf16.mxu1 %v1224_v7  ;;  %v1277_v32 = vld [vmem:[#allocation7 + $0x40] ss:$8 sps:$4 sm:$0xff]   ;;  %v1278_v34 = vld [vmem:[#allocation7 + $0x54] ss:$8 sps:$4 sm:$0xff]   ;;  %v1280_v36 = vld [vmem:[#allocation7 + $0x50] ss:$8 sps:$4 sm:$0xff]  }
  0x57   :  { %v1245_v33 = vld [vmem:[#allocation5 + $0x48] ss:$16 sps:$4 sm:$0xff]   ;;  %v1250_v35 = vld [vmem:[#allocation5 + $0x6c] ss:$16 sps:$4 sm:$0xff]   ;;  %v1359_v3 = vld [vmem:[#allocation8 + $0x40] sm:$0xff]   ;;  %v1597_v16 = vshrl.u32 %v116_v15, 7 }
  0x58   :  { %785 = vmatpush1.bf16.msra.mxu0 %v1268_v19  ;;  %v1281_v37 = vld [vmem:[#allocation7 + $0x64] ss:$8 sps:$4 sm:$0xff]   ;;  %v1248_v38 = vld [vmem:[#allocation5 + $0x68] ss:$16 sps:$4 sm:$0xff]   ;;  %v1284_v41 = vld [vmem:[#allocation7 + $0x74] ss:$8 sps:$4 sm:$0xff]  }
  0x59   :  { %303 = vmatpush1.bf16.msra.mxu1 %v1226_v8  ;;  %786 = vmatprep.subr.bf16.mxu0 %v1269_v20  ;;  %v1253_v39 = vld [vmem:[#allocation5 + $0x8c] ss:$16 sps:$4 sm:$0xff]   ;;  %v1283_v40 = vld [vmem:[#allocation7 + $0x60] ss:$8 sps:$4 sm:$0xff]   ;;  %v1286_v44 = vld [vmem:[#allocation7 + $0x70] ss:$8 sps:$4 sm:$0xff]  }
  0x5a   :  { %304 = vmatprep.subr.bf16.mxu1 %v1227_v9  ;;  %v1251_v42 = vld [vmem:[#allocation5 + $0x88] ss:$16 sps:$4 sm:$0xff]   ;;  %v1256_v43 = vld [vmem:[#allocation5 + $0xac] ss:$16 sps:$4 sm:$0xff]   ;;  %v1360_v4 = vld [vmem:[#allocation8] sm:$0xff]   ;;  %v118_v17 = vsub.s32 0, %v1597_v16 }
  0x5b   :  { %v1287_v45 = vld [vmem:[#allocation7 + $0x84] ss:$8 sps:$4 sm:$0xff]   ;;  %v1254_v46 = vld [vmem:[#allocation5 + $0xa8] ss:$16 sps:$4 sm:$0xff]   ;;  %v1290_v49 = vld [vmem:[#allocation7 + $0x94] ss:$8 sps:$4 sm:$0xff]  }
  0x5c   :  { %787 = vmatpush1.bf16.msra.mxu0 %v1271_v23  ;;  %v1259_v47 = vld [vmem:[#allocation5 + $0xcc] ss:$16 sps:$4 sm:$0xff]   ;;  %v1289_v48 = vld [vmem:[#allocation7 + $0x80] ss:$8 sps:$4 sm:$0xff]   ;;  %v1292_v52 = vld [vmem:[#allocation7 + $0x90] ss:$8 sps:$4 sm:$0xff]  }
  0x5d   :  { %305 = vmatpush1.bf16.msra.mxu1 %v1229_v10  ;;  %788 = vmatprep.subr.bf16.mxu0 %v1272_v25  ;;  %v1257_v50 = vld [vmem:[#allocation5 + $0xc8] ss:$16 sps:$4 sm:$0xff]   ;;  %v1262_v51 = vld [vmem:[#allocation5 + $0xec] ss:$16 sps:$4 sm:$0xff]   ;;  %v1363_v7 = vld [vmem:[#allocation8 + $0x50] sm:$0xff]   ;;  %v122_v19 = vsub.s32 1, %v1597_v16 }
  0x5e   :  { %306 = vmatprep.subr.bf16.mxu1 %v1230_v11  ;;  %v1293_v53 = vld [vmem:[#allocation7 + $0xa4] ss:$8 sps:$4 sm:$0xff]   ;;  %v1260_v54 = vld [vmem:[#allocation5 + $0xe8] ss:$16 sps:$4 sm:$0xff]   ;;  %v1296_v56 = vld [vmem:[#allocation7 + $0xb4] ss:$8 sps:$4 sm:$0xff]  }
  0x5f   :  { %v1295_v55 = vld [vmem:[#allocation7 + $0xa0] ss:$8 sps:$4 sm:$0xff]   ;;  %v1298_v57 = vld [vmem:[#allocation7 + $0xb0] ss:$8 sps:$4 sm:$0xff]   ;;  %v1299_v58 = vld [vmem:[#allocation7 + $0xc4] ss:$8 sps:$4 sm:$0xff]  }
  0x60   :  { %789 = vmatpush1.bf16.msra.mxu0 %v1274_v28  ;;  %v1301_v59 = vld [vmem:[#allocation7 + $0xc0] ss:$8 sps:$4 sm:$0xff]   ;;  %v1302_v60 = vld [vmem:[#allocation7 + $0xd4] ss:$8 sps:$4 sm:$0xff]   ;;  %v1304_v61 = vld [vmem:[#allocation7 + $0xd0] ss:$8 sps:$4 sm:$0xff]  }
  0x61   :  { %307 = vmatpush1.bf16.msra.mxu1 %v1232_v12  ;;  %790 = vmatprep.subr.bf16.mxu0 %v1275_v29  ;;  %v1305_v62 = vld [vmem:[#allocation7 + $0xe4] ss:$8 sps:$4 sm:$0xff]   ;;  %v1307_v63 = vld [vmem:[#allocation7 + $0xe0] ss:$8 sps:$4 sm:$0xff]   ;;  %v1310_v1 = vld [vmem:[#allocation7 + $0xf0] ss:$8 sps:$4 sm:$0xff]  }
  0x62   :  { %308 = vmatprep.subr.bf16.mxu1 %v1233_v13  ;;  %v1313_v2 = vld [vmem:[#allocation7 + $0x104] ss:$8 sps:$4 sm:$0xff]   ;;  %v1364_v8 = vld [vmem:[#allocation8 + $0x10] sm:$0xff]   ;;  %v1365_v9 = vld [vmem:[#allocation8 + $0x58] sm:$0xff]   ;;  %s1051_s9 = sshll.u32 %s1504_s8, 4  ;;  %s1052_s9 = int_to_ptr.vmem [resolvable:$true] %s1051_s9 }
  0x63   :  { %v1361_v5 = vld [vmem:[#allocation8 + $0x48] sm:$0xff]   ;;  %v1366_v10 = vld [vmem:[#allocation8 + $0x18] sm:$0xff]   ;;  %v1367_v11 = vld [vmem:[#allocation8 + $0x60] sm:$0xff]   ;;  %s1463_s10 = scalar_lea.vmem %s1052_s9, 64  ;;  %p1468_p5 = scmp.lt.s32.totalorder %s1052_s9, %s1052_s9 }
  0x64   :  { %791 = vmatpush1.bf16.msra.mxu0 %v1277_v32  ;;  %v1362_v6 = vld [vmem:[#allocation8 + $0x8] sm:$0xff]   ;;  %v1368_v12 = vld [vmem:[#allocation8 + $0x20] sm:$0xff]   ;;  %v1373_v15 = vld [vmem:[#allocation8 + $0x78] sm:$0xff]   ;;  %p1464_p4 = scmp.ne.s32.totalorder %s1052_s9, %s1463_s10  ;;  %p1469_p6 = scmp.lt.s32.totalorder %s1463_s10, %s1463_s10 }
  0x65   :  { %309 = vmatpush1.bf16.msra.mxu1 %v1235_v14  ;;  %792 = vmatprep.subr.bf16.mxu0 %v1278_v34  ;;  %v1369_v13 = vld [vmem:[#allocation8 + $0x68] sm:$0xff]   ;;  %v1314_v34 = vld [vmem:[#allocation7 + $0x110] ss:$8 sps:$4 sm:$0xff]  }
  0x66   :  { %310 = vmatprep.subr.bf16.mxu1 %v1236_v18  ;;  %v1370_v14 = vld [vmem:[#allocation8 + $0x28] sm:$0xff]   ;;  %v1603_v18 = vld [vmem:[%s1640_s2] sm:$0xf]  ;;  %p1470_p7 = por %p1469_p6, %p1468_p5 }
  0x67   :  { %v119_v20 = vrot.slane %v1603_v18, %v118_v17 }
  0x68   :  { %793 = vmatpush1.bf16.msra.mxu0 %v1280_v36  ;;  %v1317_v36 = vld [vmem:[#allocation7 + $0x120] ss:$8 sps:$4 sm:$0xff]   ;;  %p1471_p8 = pnand %p1470_p7, %p1464_p4 }
  0x69   :  { %311 = vmatpush1.bf16.msra.mxu1 %v1238_v21  ;;  %794 = vmatprep.subr.bf16.mxu0 %v1281_v37  ;;  %v123_v21 = vrot.slane %v1603_v18, %v122_v19  ;;  %v1322_v37 = vld [vmem:[#allocation7 + $0x134] ss:$8 sps:$4 sm:$0xff]  }
  0x6a   :  { %337 = vmatprep.subr.bf16.mxu1 %v1241_v22 }
  0x6c   :  { %329 = vmatmul.mubr.bf16.vlgmr.msra.gmra.mrb[0].mxu1 %v1593_v24  ;;  %795 = vmatpush1.bf16.msra.mxu0 %v1283_v40  ;;  %v1323_v40 = vld [vmem:[#allocation7 + $0x140] ss:$8 sps:$4 sm:$0xff]  }
  0x6d   :  { %338 = vmatpush1.bf16.msra.mxu1 %v1239_v26  ;;  %369 = vmatprep.mubr.bf16.mxu1 %v1503_v0  ;;  %v1308_v0 = vld [vmem:[#allocation7 + $0xf4] ss:$8 sps:$4 sm:$0xff]  }
  0x6e   :  { %339 = vmatprep.subr.bf16.mxu1 %v1244_v27  ;;  %796 = vmatprep.subr.bf16.mxu0 %v1284_v41  ;;  %v1328_v41 = vld [vmem:[#allocation7 + $0x154] ss:$8 sps:$4 sm:$0xff]  }
  0x70   :  { %797 = vmatpush1.bf16.msra.mxu0 %v1286_v44  ;;  %v1331_v44 = vld [vmem:[#allocation7 + $0x164] ss:$8 sps:$4 sm:$0xff]  }
  0x71   :  { %340 = vmatpush1.bf16.msra.mxu1 %v1242_v30  ;;  %798 = vmatprep.subr.bf16.mxu0 %v1287_v45  ;;  %v1329_v45 = vld [vmem:[#allocation7 + $0x160] ss:$8 sps:$4 sm:$0xff]  }
  0x72   :  { %341 = vmatprep.subr.bf16.mxu1 %v1247_v31  ;;  %v1311_v31 = vld [vmem:[#allocation7 + $0x100] ss:$8 sps:$4 sm:$0xff]  }
  0x74   :  { %799 = vmatpush1.bf16.msra.mxu0 %v1289_v48 }
  0x75   :  { %342 = vmatpush1.bf16.msra.mxu1 %v1245_v33  ;;  %800 = vmatprep.subr.bf16.mxu0 %v1290_v49  ;;  %v1316_v33 = vld [vmem:[#allocation7 + $0x114] ss:$8 sps:$4 sm:$0xff]  }
  0x76   :  { %343 = vmatprep.subr.bf16.mxu1 %v1250_v35  ;;  %v1319_v35 = vld [vmem:[#allocation7 + $0x124] ss:$8 sps:$4 sm:$0xff]  }
  0x78   :  { %801 = vmatpush1.bf16.msra.mxu0 %v1292_v52 }
  0x79   :  { %344 = vmatpush1.bf16.msra.mxu1 %v1248_v38  ;;  %802 = vmatprep.subr.bf16.mxu0 %v1293_v53  ;;  %v1320_v38 = vld [vmem:[#allocation7 + $0x130] ss:$8 sps:$4 sm:$0xff]   ;;  %v1337_v53 = vld [vmem:[#allocation7 + $0x184] ss:$8 sps:$4 sm:$0xff]  }
  0x7a   :  { %345 = vmatprep.subr.bf16.mxu1 %v1253_v39  ;;  %v1325_v39 = vld [vmem:[#allocation7 + $0x144] ss:$8 sps:$4 sm:$0xff]  }
  0x7c   :  { %803 = vmatpush1.bf16.msra.mxu0 %v1295_v55 }
  0x7d   :  { %346 = vmatpush1.bf16.msra.mxu1 %v1251_v42  ;;  %804 = vmatprep.subr.bf16.mxu0 %v1296_v56  ;;  %v1326_v42 = vld [vmem:[#allocation7 + $0x150] ss:$8 sps:$4 sm:$0xff]   ;;  %v1335_v56 = vld [vmem:[#allocation7 + $0x180] ss:$8 sps:$4 sm:$0xff]  }
  0x7e   :  { %347 = vmatprep.subr.bf16.mxu1 %v1256_v43  ;;  %v130_v43 = vsub.s32 3, %v1597_v16 }
  0x80   :  { %805 = vmatpush1.bf16.msra.mxu0 %v1298_v57 }
  0x81   :  { %348 = vmatpush1.bf16.msra.mxu1 %v1254_v46  ;;  %806 = vmatprep.subr.bf16.mxu0 %v1299_v58  ;;  %v131_v46 = vrot.slane %v1603_v18, %v130_v43  ;;  %v1340_v58 = vld [vmem:[#allocation7 + $0x194] ss:$8 sps:$4 sm:$0xff]  }
  0x82   :  { %349 = vmatprep.subr.bf16.mxu1 %v1259_v47  ;;  %v1334_v47 = vld [vmem:[#allocation7 + $0x174] ss:$8 sps:$4 sm:$0xff]  }
  0x84   :  { %807 = vmatpush1.bf16.msra.mxu0 %v1301_v59  ;;  %v1338_v59 = vld [vmem:[#allocation7 + $0x190] ss:$8 sps:$4 sm:$0xff]  }
  0x85   :  { %350 = vmatpush1.bf16.msra.mxu1 %v1257_v50  ;;  %808 = vmatprep.subr.bf16.mxu0 %v1302_v60  ;;  %v1332_v50 = vld [vmem:[#allocation7 + $0x170] ss:$8 sps:$4 sm:$0xff]   ;;  %v1343_v60 = vld [vmem:[#allocation7 + $0x1a4] ss:$8 sps:$4 sm:$0xff]  }
  0x86   :  { %351 = vmatprep.subr.bf16.mxu1 %v1262_v51 }
  0x88   :  { %809 = vmatpush1.bf16.msra.mxu0 %v1304_v61  ;;  %v1341_v61 = vld [vmem:[#allocation7 + $0x1a0] ss:$8 sps:$4 sm:$0xff]  }
  0x89   :  { %352 = vmatpush1.bf16.msra.mxu1 %v1260_v54  ;;  %810 = vmatprep.subr.bf16.mxu0 %v1305_v62  ;;  %v1346_v62 = vld [vmem:[#allocation7 + $0x1b4] ss:$8 sps:$4 sm:$0xff]  }
  0x8a   :  { %1175 = vmatprep.subr.bf16.mxu1 %v1359_v3  ;;  %v1352_v3 = vld [vmem:[#allocation7 + $0x1d4] ss:$8 sps:$4 sm:$0xff]  }
  0x8c   :  { %370 = vmatmul.mubr.bf16.vlgmr.msra.gmra.mrb[4].mxu1 %v1593_v24  ;;  %811 = vmatpush1.bf16.msra.mxu0 %v1307_v63  ;;  %v1344_v63 = vld [vmem:[#allocation7 + $0x1b0] ss:$8 sps:$4 sm:$0xff]  }
  0x8d   :  { %812 = vmatprep.subr.bf16.mxu0 %v1308_v0  ;;  %1176 = vmatpush3.bf16.msra.mxu1 %v1360_v4  ;;  %v1349_v0 = vld [vmem:[#allocation7 + $0x1c4] ss:$8 sps:$4 sm:$0xff]   ;;  %v1350_v4 = vld [vmem:[#allocation7 + $0x1d0] ss:$8 sps:$4 sm:$0xff]  }
  0x8e   :  { %1177 = vmatprep.subr.bf16.mxu1 %v1361_v5 }
  0x90   :  { %813 = vmatpush1.bf16.msra.mxu0 %v1310_v1  ;;  %v1347_v1 = vld [vmem:[#allocation7 + $0x1c0] ss:$8 sps:$4 sm:$0xff]  }
  0x91   :  { %823 = vmatprep.subr.bf16.mxu0 %v1313_v2  ;;  %1178 = vmatpush3.bf16.msra.mxu1 %v1362_v6  ;;  %v126_v2 = vsub.s32 2, %v1597_v16  ;;  %v1355_v6 = vld [vmem:[#allocation7 + $0x1e4] ss:$8 sps:$4 sm:$0xff]  }
  0x92   :  { %1179 = vmatprep.subr.bf16.mxu1 %v1363_v7  ;;  %v1353_v7 = vld [vmem:[#allocation7 + $0x1e0] ss:$8 sps:$4 sm:$0xff]  }
  0x93   :  { %v127_v5 = vrot.slane %v1603_v18, %v126_v2  ;;  %v1374_v18 = vld [vmem:[#allocation8 + $0x38] sm:$0xff]  }
  0x95   :  { %1180 = vmatpush3.bf16.msra.mxu1 %v1364_v8 }
  0x96   :  { %1181 = vmatprep.subr.bf16.mxu1 %v1365_v9  ;;  %v1358_v9 = vld [vmem:[#allocation7 + $0x1f4] ss:$8 sps:$4 sm:$0xff]  }
  0x99   :  { %1182 = vmatpush3.bf16.msra.mxu1 %v1366_v10  ;;  %v1356_v10 = vld [vmem:[#allocation7 + $0x1f0] ss:$8 sps:$4 sm:$0xff]  }
  0x9a   :  { %1183 = vmatprep.subr.bf16.mxu1 %v1367_v11 }
  0x9d   :  { %1184 = vmatpush3.bf16.msra.mxu1 %v1368_v12 }
  0x9e   :  { %1185 = vmatprep.subr.bf16.mxu1 %v1369_v13  ;;  %v1371_v13 = vld [vmem:[#allocation8 + $0x70] sm:$0xff]  }
  0xa1   :  { %1186 = vmatpush3.bf16.msra.mxu1 %v1370_v14  ;;  %v1372_v14 = vld [vmem:[#allocation8 + $0x30] sm:$0xff]  }
  0xa2   :  { %1187 = vmatprep.subr.bf16.mxu1 %v1371_v13 }
  0xa5   :  { %1188 = vmatpush3.bf16.msra.mxu1 %v1372_v14 }
  0xa6   :  { %1189 = vmatprep.subr.bf16.mxu1 %v1373_v15 }
  0xa9   :  { %1190 = vmatpush3.bf16.msra.mxu1 %v1374_v18 }
 0x13f   :  { %v330_v22 = vpop.f32.mrb[0].mxu1 }
 0x140   :  { %v331_v23 = vadd.f32 %v330_v22, %v119_v20  ;;  %v332_v24 = vpop.f32.mrb[1].mxu1  ;;  %v450_v20 = vld [vmem:[%s1642_s4] sm:$0x3] }
 0x141   :  { %v333_v25 = vadd.f32 %v332_v24, %v123_v21  ;;  %v334_v26 = vpop.f32.mrb[2].mxu1  ;;  %v455_v21 = vrot.slane %v450_v20, %v118_v17  ;;  %v459_v22 = vrot.slane %v450_v20, %v122_v19  ;;  %v1158_v17 = vld [vmem:[%s1644_s6] ss:$0 sm:$0xff] }
 0x142   :  { %v378_v27 = vmax.f32 %v331_v23, 0.0  ;;  %v335_v28 = vpop.f32.mrb[3].mxu1 }
 0x143   :  { %v379_v29 = vmax.f32 %v333_v25, 0.0 }
 0x144   :  { %v382_v32 = vpack.c.bf16 %v378_v27, %v378_v27 }
 0x145   :  { %v383_v30 = vpack.c.bf16 %v379_v29, %v379_v29 }
 0x147   :  { %814 = vmatprep.mubr.bf16.mxu0 %v383_v30 }
 0x148   :  { %815 = vmatmul.mubr.bf16.vlgmr.msra.gmra.mrb[0].mxu0 %v382_v32 }
 0x149   :  { %824 = vmatpush1.bf16.msra.mxu0 %v1311_v31 }
 0x14a   :  { %825 = vmatprep.subr.bf16.mxu0 %v1316_v33 }
 0x14d   :  { %826 = vmatpush1.bf16.msra.mxu0 %v1314_v34 }
 0x14e   :  { %827 = vmatprep.subr.bf16.mxu0 %v1319_v35 }
 0x151   :  { %828 = vmatpush1.bf16.msra.mxu0 %v1317_v36 }
 0x152   :  { %829 = vmatprep.subr.bf16.mxu0 %v1322_v37 }
 0x155   :  { %830 = vmatpush1.bf16.msra.mxu0 %v1320_v38 }
 0x156   :  { %831 = vmatprep.subr.bf16.mxu0 %v1325_v39 }
 0x159   :  { %832 = vmatpush1.bf16.msra.mxu0 %v1323_v40 }
 0x15a   :  { %833 = vmatprep.subr.bf16.mxu0 %v1328_v41 }
 0x15d   :  { %834 = vmatpush1.bf16.msra.mxu0 %v1326_v42 }
 0x15e   :  { %835 = vmatprep.subr.bf16.mxu0 %v1331_v44 }
 0x15f   :  { %v371_v48 = vpop.f32.mrb[4].mxu1 }
 0x160   :  { %v373_v49 = vpop.f32.mrb[5].mxu1  ;;  %v372_v8 = vadd.f32 %v371_v48, %v127_v5 }
 0x161   :  { %836 = vmatpush1.bf16.msra.mxu0 %v1329_v45  ;;  %v374_v51 = vadd.f32 %v373_v49, %v131_v46  ;;  %v375_v52 = vpop.f32.mrb[6].mxu1 }
 0x162   :  { %837 = vmatprep.subr.bf16.mxu0 %v1334_v47  ;;  %v376_v54 = vpop.f32.mrb[7].mxu1  ;;  %v380_v11 = vmax.f32 %v372_v8, 0.0 }
 0x163   :  { %v381_v55 = vmax.f32 %v374_v51, 0.0 }
 0x164   :  { %v384_v12 = vpack.c.bf16 %v380_v11, %v380_v11 }
 0x165   :  { %838 = vmatpush1.bf16.msra.mxu0 %v1332_v50  ;;  %v385_v57 = vpack.c.bf16 %v381_v55, %v381_v55 }
 0x166   :  { %839 = vmatprep.subr.bf16.mxu0 %v1337_v53 }
 0x167   :  { %855 = vmatprep.mubr.bf16.mxu0 %v385_v57 }
 0x169   :  { %840 = vmatpush1.bf16.msra.mxu0 %v1335_v56 }
 0x16a   :  { %841 = vmatprep.subr.bf16.mxu0 %v1340_v58 }
 0x16d   :  { %842 = vmatpush1.bf16.msra.mxu0 %v1338_v59 }
 0x16e   :  { %843 = vmatprep.subr.bf16.mxu0 %v1343_v60 }
 0x171   :  { %844 = vmatpush1.bf16.msra.mxu0 %v1341_v61 }
 0x172   :  { %845 = vmatprep.subr.bf16.mxu0 %v1346_v62 }
 0x175   :  { %846 = vmatpush1.bf16.msra.mxu0 %v1344_v63 }
 0x176   :  { %847 = vmatprep.subr.bf16.mxu0 %v1349_v0 }
 0x179   :  { %848 = vmatpush1.bf16.msra.mxu0 %v1347_v1 }
 0x17a   :  { %849 = vmatprep.subr.bf16.mxu0 %v1352_v3 }
 0x17d   :  { %850 = vmatpush1.bf16.msra.mxu0 %v1350_v4 }
 0x17e   :  { %851 = vmatprep.subr.bf16.mxu0 %v1355_v6 }
 0x181   :  { %852 = vmatpush1.bf16.msra.mxu0 %v1353_v7 }
 0x182   :  { %853 = vmatprep.subr.bf16.mxu0 %v1358_v9 }
 0x185   :  { %854 = vmatpush1.bf16.msra.mxu0 %v1356_v10 }
 0x188   :  { %856 = vmatmul.mubr.bf16.vlgmr.msra.gmra.mrb[0].mxu0 %v384_v12 }
 0x25b   :  { %v857_v23 = vpop.f32.mrb[0].mxu0 }
 0x25c   :  { %v1197_v24 = vadd.f32 %v857_v23, %v455_v21  ;;  %v859_v25 = vpop.f32.mrb[1].mxu0 }
 0x25d   :  { %v1198_v26 = vadd.f32 %v859_v25, %v459_v22  ;;  %v861_v27 = vpop.f32.mrb[2].mxu0 }
 0x25e   :  { %v864_v28 = vmax.f32 %v1197_v24, 0.0  ;;  %v862_v29 = vpop.f32.mrb[3].mxu0 }
 0x25f   :  { %v865_v30 = vmax.f32 %v1198_v26, 0.0 }
 0x260   :  { %v866_v32 = vpack.c.bf16 %v864_v28, %v864_v28 }
 0x261   :  { %v867_v31 = vpack.c.bf16 %v865_v30, %v865_v30 }
 0x263   :  { %1035 = vmatprep.mubr.bf16.mxu1 %v867_v31 }
 0x264   :  { %1036 = vmatmul.mubr.bf16.vlgmr.msra.gmra.mrb[8].mxu1 %v866_v32 }
 0x337   :  { %v1191_v33 = vpop.f32.mrb[8].mxu1 }
 0x338   :  { %v1192_v34 = vpop.f32.mrb[9].mxu1 }
 0x339   :  { %v1193_v16 = vadd.f32 %v1192_v34, %v1191_v33  ;;  %v1194_v19 = vpop.f32.mrb[10].mxu1 }
 0x33a   :  { %v1195_v35 = vpop.f32.mrb[11].mxu1 }
 0x33b   :  { %v1038_v36 = vadd.f32 %v1193_v16, %v1158_v17 }
 0x33d   :  { %v1043_v37 = vpack.c.bf16 %v1038_v36, %v1038_v36 }
 0x33f   :  { %1044 = vst [vmem:[#allocation10] sm:$0xf] %v1043_v37 }
 0x340   :  { %1474 = shalt.err (!%p1471_p8)
}
 0x341   :  { %s1475_s6 = scalar_lea.hbm %s1645_s7, 64 }
 0x342   :  { %p1476_p9 = scmp.ne.s32.totalorder %s1645_s7, %s1475_s6  ;;  %p1479_p10 = scmp.lt.u32.totalorder %s1475_s6, %s1645_s7 }
 0x344   :  { %p1481_p11 = pnand %p1479_p10, %p1476_p9 }
 0x346   :  { %1484 = shalt.err (!%p1481_p11)
}
 0x347   :  { %1054 = dma.vmem_to_hbm [thread:$0]  %s1052_s9, 64, %s1645_s7, [#allocation4]  }
 0x348   :  { %1491 = dma.done.wait [#allocation4], 64  }
 0x349   :  { %1492 = vsyncadd [#allocation4], 4294967232 }
 0x34a   :  { %1058 = vsyncpa [#allocation3], 1 }
 0x34b   :  { %1059 = vsyncpa [#allocation6], 1 }
 0x34c   :  { %1060 = vsyncpa [#allocation9], 1 }
 0x34d   :  { %1061 = vsyncpa [#allocation4], 1 }

</bundles_post_ra>
